<compile_context>
chip_gen: v7x
topology: tpu7x:2x2x1
jax: 0.10.0
libtpu: 0.0.40
codegen_flags: <defaults>
</compile_context>

<pallas_src>
import functools
import math

import jax
import jax.numpy as jnp
from jax.experimental import pallas as pl
from jax.experimental.pallas import tpu as pltpu

BN_EPS = 1e-3       # transform_net / PointNet conv BNs (module sets eps=0.001)
FC_BN_EPS = 1e-5    # PointNet bn6/bn7 keep nn.BatchNorm1d's default eps
STAT_ROWS = 8       # stats arrays padded to 8 sublanes: row0=mean/sum, row1=var/sumsq

_VMEM_LIMIT_CACHE = None


def _vmem_limit():
    """75% of physical VMEM (48 MiB on v7x, 96 MiB on v5e/v6e), capped."""
    global _VMEM_LIMIT_CACHE
    if _VMEM_LIMIT_CACHE is None:
        try:
            cap = int(pltpu.get_tpu_info().vmem_capacity_bytes)
        except Exception:  # pragma: no cover - conservative fallback
            cap = 128 * 1024 * 1024
        _VMEM_LIMIT_CACHE = min((cap * 3) // 4, 100 * 1024 * 1024)
    return _VMEM_LIMIT_CACHE


def _choose_par_split(B, n_t):
    """v7x has 2 TensorCores; if B is odd, fold point tiles into the parallel
    axis so the parallel extent stays even and neither core idles."""
    if B % 2 == 0 or n_t % 2 != 0:
        return 1
    return 2


# ---------------------------------------------------------------------------
# Generic tiled stage: [BN(prev stats)+ReLU] -> 1x1-conv matmul (+bias)
# (weight optionally per-batch = transform folded in) -> accumulate
# sum/sumsq for the next BN (+ optional per-batch running max).
# ---------------------------------------------------------------------------
def _make_stage_kernel(*, have_bn, want_h, want_max, eps):
    def kernel(*refs):
        i = 0
        x_ref = refs[i]; i += 1
        st_ref = None
        if have_bn:
            st_ref = refs[i]; i += 1
        w_ref = refs[i]; i += 1
        b_ref = refs[i]; i += 1
        h_ref = None
        if want_h:
            h_ref = refs[i]; i += 1
        stats_ref = refs[i]; i += 1
        max_ref = refs[i] if want_max else None

        t = pl.program_id(1)

        z = x_ref[...].astype(jnp.float32)                   # (rows, Cin)
        if have_bn:                                          # previous layer's BN+ReLU
            mean = st_ref[0:1, :]
            var = st_ref[1:2, :]
            z = jnp.maximum((z - mean) * jax.lax.rsqrt(var + eps), 0.0)
        h = jnp.dot(z.astype(jnp.bfloat16), w_ref[...],
                    preferred_element_type=jnp.float32) + b_ref[...]

        if want_h:
            h_ref[...] = h.astype(jnp.bfloat16)              # bf16 HBM activations

        @pl.when(t == 0)                                     # first tile of this chunk
        def _init():
            stats_ref[...] = jnp.zeros_like(stats_ref)
            if want_max:
                max_ref[...] = jnp.full_like(max_ref, -jnp.inf)

        upd = jnp.concatenate([jnp.sum(h, axis=0, keepdims=True),
                               jnp.sum(h * h, axis=0, keepdims=True)], axis=0)
        stats_ref[0:2, :] = stats_ref[0:2, :] + upd          # one stacked 2-row store
        if want_max:                                         # fused max-pool accumulator
            max_ref[...] = jnp.maximum(max_ref[...],
                                       jnp.max(h, axis=0, keepdims=True))
    return kernel


def conv_bn_stage(x, w, b, *, B, N, row_tile, par_split=1, stats_in=None,
                  per_batch_w=False, want_h=True, want_max=False, eps=BN_EPS):
    """x: (B*N, Cin) points-major (f32 or bf16); w: (Cin, Cout) bf16 shared or
    (B, Cin, Cout) bf16 per-batch (transform folded); b: (1, Cout) f32."""
    R, Cin = x.shape
    Cout = w.shape[-1]
    assert R == B * N
    assert N % row_tile == 0 and row_tile % 16 == 0
    n_t = N // row_tile
    assert n_t % par_split == 0
    n_in = n_t // par_split
    G = B * par_split

    row_map = lambda bi, ti: (bi * n_in + ti, 0)
    const2 = lambda bi, ti: (0, 0)

    in_specs = [pl.BlockSpec((row_tile, Cin), row_map)]
    inputs = [x]
    if stats_in is not None:
        in_specs.append(pl.BlockSpec((STAT_ROWS, Cin), const2))
        inputs.append(stats_in)
    # weights / bias: DMA'd once (constant or slowly-varying index), VMEM resident.
    if per_batch_w:
        in_specs.append(pl.BlockSpec((None, Cin, Cout),
                                     lambda bi, ti: (bi // par_split, 0, 0)))
    else:
        in_specs.append(pl.BlockSpec((Cin, Cout), const2))
    inputs.append(w)
    in_specs.append(pl.BlockSpec((1, Cout), const2))
    inputs.append(b)

    out_shapes, out_specs = [], []
    if want_h:
        out_shapes.append(jax.ShapeDtypeStruct((R, Cout), jnp.bfloat16))
        out_specs.append(pl.BlockSpec((row_tile, Cout), row_map))
    # per-chunk partial [sum; sumsq] (finalized wrapper-side).
    out_shapes.append(jax.ShapeDtypeStruct((G, STAT_ROWS, Cout), jnp.float32))
    out_specs.append(pl.BlockSpec((None, STAT_ROWS, Cout), lambda bi, ti: (bi, 0, 0)))
    if want_max:
        out_shapes.append(jax.ShapeDtypeStruct((G, STAT_ROWS, Cout), jnp.float32))
        out_specs.append(pl.BlockSpec((None, STAT_ROWS, Cout),
                                      lambda bi, ti: (bi, 0, 0)))

    kernel = _make_stage_kernel(have_bn=stats_in is not None,
                                want_h=want_h, want_max=want_max, eps=eps)
    return pl.pallas_call(
        kernel,
        grid=(G, n_in),
        in_specs=in_specs,
        out_specs=tuple(out_specs),
        out_shape=tuple(out_shapes),
        compiler_params=pltpu.CompilerParams(
            dimension_semantics=("parallel", "arbitrary"),
            vmem_limit_bytes=_vmem_limit()),
    )(*inputs)


def finalize_stats(stats_partial, count):
    """(G, 8, C) per-chunk [sum; sumsq] partials -> (8, C) [mean; var]."""
    s = jnp.sum(stats_partial[:, 0, :], axis=0)
    ss = jnp.sum(stats_partial[:, 1, :], axis=0)
    mean = s / count
    var = jnp.maximum(ss / count - mean * mean, 0.0)
    out = jnp.zeros((STAT_ROWS, mean.shape[0]), jnp.float32)
    return out.at[0].set(mean).at[1].set(var)


def _combine_max(mx_partial, B, par_split):
    G, SR, C = mx_partial.shape
    return mx_partial.reshape(B, par_split, SR, C)[:, :, 0, :].max(axis=1)


def _fold_transform(T, w):
    """Fold per-batch bmm into the conv weight: (z @ T) @ W == z @ (T @ W)."""
    wb = jnp.einsum('bij,jk->bik', T.astype(jnp.float32), w.astype(jnp.float32))
    return wb.astype(jnp.bfloat16)


# ---------------------------------------------------------------------------
# Fused conv5: BN(s4)+ReLU + k=3 neighbour shifts + three tap matmuls + stats
# + per-batch running max.  Halo rows (post-BN-ReLU, zero at batch edges to
# match Conv1d zero padding) are built wrapper-side (2 rows per tile).
# ---------------------------------------------------------------------------
def _conv5_kernel(x_ref, st_ref, prev_ref, next_ref, wm1_ref, wc_ref, wp1_ref,
                  b_ref, stats_ref, max_ref, *, eps):
    t = pl.program_id(1)
    mean = st_ref[0:1, :]
    var = st_ref[1:2, :]
    z = jnp.maximum((x_ref[...].astype(jnp.float32) - mean)
                    * jax.lax.rsqrt(var + eps), 0.0)          # (rows, 128)
    prev = prev_ref[...]                                      # (1, 128), post-BN-ReLU
    nxt = next_ref[...]
    z_m1 = jnp.concatenate([prev, z[:-1, :]], axis=0)         # feat[n-1]
    z_p1 = jnp.concatenate([z[1:, :], nxt], axis=0)           # feat[n+1]

    h = (jnp.dot(z_m1.astype(jnp.bfloat16), wm1_ref[...],
                 preferred_element_type=jnp.float32)
         + jnp.dot(z.astype(jnp.bfloat16), wc_ref[...],
                   preferred_element_type=jnp.float32)
         + jnp.dot(z_p1.astype(jnp.bfloat16), wp1_ref[...],
                   preferred_element_type=jnp.float32)
         + b_ref[...])

    @pl.when(t == 0)
    def _init():
        stats_ref[...] = jnp.zeros_like(stats_ref)
        max_ref[...] = jnp.full_like(max_ref, -jnp.inf)

    upd = jnp.concatenate([jnp.sum(h, axis=0, keepdims=True),
                           jnp.sum(h * h, axis=0, keepdims=True)], axis=0)
    stats_ref[0:2, :] = stats_ref[0:2, :] + upd
    max_ref[...] = jnp.maximum(max_ref[...], jnp.max(h, axis=0, keepdims=True))


def _conv5_halos(h4, s4, B, N, row_tile, eps=BN_EPS):
    """Per-tile halo rows of BN+ReLU'd h4; zero at batch boundaries."""
    R, C = h4.shape
    n_t = N // row_tile
    mean = s4[0:1, :]
    var = s4[1:2, :]
    h4r = h4.reshape(B, n_t, row_tile, C)
    last = jnp.maximum((h4r[:, :, -1, :].astype(jnp.float32) - mean)
                       * jax.lax.rsqrt(var + eps), 0.0)       # (B, n_t, C)
    first = jnp.maximum((h4r[:, :, 0, :].astype(jnp.float32) - mean)
                        * jax.lax.rsqrt(var + eps), 0.0)
    zeros = jnp.zeros((B, 1, C), jnp.float32)
    prev_h = jnp.concatenate([zeros, last[:, :-1, :]], axis=1).reshape(B * n_t, 1, C)
    next_h = jnp.concatenate([first[:, 1:, :], zeros], axis=1).reshape(B * n_t, 1, C)
    return prev_h, next_h


def conv5_stage(h4, s4, prev_halo, next_halo, wm1, wc, wp1, b, *,
                B, N, row_tile, par_split, eps=BN_EPS):
    R, Cin = h4.shape
    Cout = wc.shape[1]
    n_t = N // row_tile
    n_in = n_t // par_split
    G = B * par_split

    row_map = lambda bi, ti: (bi * n_in + ti, 0)
    halo_map = lambda bi, ti: (bi * n_in + ti, 0, 0)
    const2 = lambda bi, ti: (0, 0)

    in_specs = [
        pl.BlockSpec((row_tile, Cin), row_map),
        pl.BlockSpec((STAT_ROWS, Cin), const2),
        pl.BlockSpec((None, 1, Cin), halo_map),
        pl.BlockSpec((None, 1, Cin), halo_map),
        pl.BlockSpec((Cin, Cout), const2),
        pl.BlockSpec((Cin, Cout), const2),
        pl.BlockSpec((Cin, Cout), const2),
        pl.BlockSpec((1, Cout), const2),
    ]
    out_specs = (pl.BlockSpec((None, STAT_ROWS, Cout), lambda bi, ti: (bi, 0, 0)),
                 pl.BlockSpec((None, STAT_ROWS, Cout), lambda bi, ti: (bi, 0, 0)))
    out_shapes = (jax.ShapeDtypeStruct((G, STAT_ROWS, Cout), jnp.float32),
                  jax.ShapeDtypeStruct((G, STAT_ROWS, Cout), jnp.float32))
    return pl.pallas_call(
        functools.partial(_conv5_kernel, eps=eps),
        grid=(G, n_in),
        in_specs=in_specs,
        out_specs=out_specs,
        out_shape=out_shapes,
        compiler_params=pltpu.CompilerParams(
            dimension_semantics=("parallel", "arbitrary"),
            vmem_limit_bytes=_vmem_limit()),
    )(h4, s4, prev_halo, next_halo, wm1, wc, wp1, b)


# ---------------------------------------------------------------------------
# Small FC heads (whole-in-VMEM pallas_calls; BN over the B rows).
# ---------------------------------------------------------------------------
def _bn_relu_rows(h, eps):
    m = jnp.mean(h, axis=0, keepdims=True)
    v = jnp.maximum(jnp.mean(h * h, axis=0, keepdims=True) - m * m, 0.0)
    return jnp.maximum((h - m) * jax.lax.rsqrt(v + eps), 0.0)


def _tnet_head_kernel(mx_ref, st_ref, w1, b1, w2, b2, w3, b3, out_ref, *, eps):
    mean = st_ref[0:1, :]
    var = st_ref[1:2, :]
    # BN+ReLU applied to the running max == max of BN+ReLU'd activations.
    pooled = jnp.maximum((mx_ref[...] - mean) * jax.lax.rsqrt(var + eps), 0.0)
    g = jnp.dot(pooled.astype(jnp.bfloat16), w1[...],
                preferred_element_type=jnp.float32) + b1[...]
    g = _bn_relu_rows(g, eps)
    g = jnp.dot(g.astype(jnp.bfloat16), w2[...],
                preferred_element_type=jnp.float32) + b2[...]
    g = _bn_relu_rows(g, eps)
    out_ref[...] = jnp.dot(g.astype(jnp.bfloat16), w3[...],
                           preferred_element_type=jnp.float32) + b3[...]


def _tnet_head(mx, stats, p, *, eps=BN_EPS):
    B = mx.shape[0]
    K = p['K']
    vmem = pl.BlockSpec(memory_space=pltpu.MemorySpace.VMEM)
    out = pl.pallas_call(
        functools.partial(_tnet_head_kernel, eps=eps),
        out_shape=jax.ShapeDtypeStruct((B, K * K), jnp.float32),
        in_specs=[vmem] * 8,
        out_specs=vmem,
        compiler_params=pltpu.CompilerParams(vmem_limit_bytes=_vmem_limit()),
    )(mx, stats, p['fw1'], p['fb1'], p['fw2'], p['fb2'], p['fw3'], p['fb3'])
    return out.reshape(B, K, K)


def _pointnet_head_kernel(mx_ref, st_ref, w1, b1, w2, b2, w3, b3, m1_ref, m2_ref,
                          out_ref, *, eps_pool, eps_fc):
    mean = st_ref[0:1, :]
    var = st_ref[1:2, :]
    pooled = jnp.maximum((mx_ref[...] - mean) * jax.lax.rsqrt(var + eps_pool), 0.0)
    g = jnp.dot(pooled.astype(jnp.bfloat16), w1[...],
                preferred_element_type=jnp.float32) + b1[...]
    g = _bn_relu_rows(g, eps_fc) * m1_ref[...]
    g = jnp.dot(g.astype(jnp.bfloat16), w2[...],
                preferred_element_type=jnp.float32) + b2[...]
    g = _bn_relu_rows(g, eps_fc) * m2_ref[...]
    out_ref[...] = jnp.dot(g.astype(jnp.bfloat16), w3[...],
                           preferred_element_type=jnp.float32) + b3[...]


# ---------------------------------------------------------------------------
# transform_net / PointNet forward (Pallas pipeline).
# ---------------------------------------------------------------------------
def transform_net_forward(x, p, *, B, N, row_tile, stats_in=None):
    """x: (B*N, Cin) points-major; stats_in: optional (8, Cin) [mean; var]."""
    ps = _choose_par_split(B, N // row_tile)
    h1, s1p = conv_bn_stage(x, p['w1'], p['b1'], B=B, N=N, row_tile=row_tile,
                            par_split=ps, stats_in=stats_in, want_h=True)
    s1 = finalize_stats(s1p, B * N)
    h2, s2p = conv_bn_stage(h1, p['w2'], p['b2'], B=B, N=N, row_tile=row_tile,
                            par_split=ps, stats_in=s1, want_h=True)
    s2 = finalize_stats(s2p, B * N)
    # conv3: never materialize (B*N, 1024); keep only stats + per-batch max.
    s3p, mx3p = conv_bn_stage(h2, p['w3'], p['b3'], B=B, N=N, row_tile=row_tile,
                              par_split=ps, stats_in=s2, want_h=False,
                              want_max=True)
    s3 = finalize_stats(s3p, B * N)
    mx3 = _combine_max(mx3p, B, ps)
    return _tnet_head(mx3, s3, p)


def _points_major_pad8(pc):
    B, C, N = pc.shape
    x = jnp.transpose(pc, (0, 2, 1)).reshape(B * N, C).astype(jnp.float32)
    if C < 8:
        x = jnp.pad(x, ((0, 0), (0, 8 - C)))
    return x


def _pad_transform(T, Kp):
    K = T.shape[1]
    if K == Kp:
        return T
    return jnp.pad(T, ((0, 0), (0, Kp - K), (0, Kp - K)))


def _im2col_k3(feat, B, N):
    """(B*N, C) -> (B*N, 3C) with zero padding at each batch boundary (ref only)."""
    C = feat.shape[1]
    f = feat.reshape(B, N, C)
    z = jnp.zeros((B, 1, C), feat.dtype)
    prev = jnp.concatenate([z, f[:, :-1, :]], axis=1)
    nxt = jnp.concatenate([f[:, 1:, :], z], axis=1)
    return jnp.concatenate([prev, f, nxt], axis=-1).reshape(B * N, 3 * C)


def pointnet_forward(pc, params, *, row_tile=None, dropout_masks=None):
    """Training-mode PointNet forward; returns (logits, feature_transform)."""
    B, C, N = pc.shape
    assert C == 3
    if row_tile is None:
        row_tile = min(N, 1024)
    assert N % row_tile == 0 and row_tile % 16 == 0
    n_t = N // row_tile
    ps = _choose_par_split(B, n_t)
    R = B * N

    x8 = _points_major_pad8(pc)                                   # (R, 8) f32

    # input transform (K=3); its bmm is folded into conv1's weight below.
    T1 = transform_net_forward(x8, params['tnet3'], B=B, N=N, row_tile=row_tile)
    T1p = _pad_transform(T1, 8)
    w1b = _fold_transform(T1p, params['c1w'])                     # (B, 8, 64)
    h1, s1p = conv_bn_stage(x8, w1b, params['c1b'], B=B, N=N, row_tile=row_tile,
                            par_split=ps, per_batch_w=True, want_h=True)
    s1 = finalize_stats(s1p, R)
    h2, s2p = conv_bn_stage(h1, params['c2w'], params['c2b'], B=B, N=N,
                            row_tile=row_tile, par_split=ps, stats_in=s1,
                            want_h=True)
    s2 = finalize_stats(s2p, R)

    # feature transform (K=64); its first stage applies PointNet bn2+relu.
    T2 = transform_net_forward(h2, params['tnet64'], B=B, N=N,
                               row_tile=row_tile, stats_in=s2)

    # conv3 (bmm with T2 folded into the weight) / conv4.
    w3b = _fold_transform(T2, params['c3w'])                      # (B, 64, 64)
    h3, s3p = conv_bn_stage(h2, w3b, params['c3b'], B=B, N=N, row_tile=row_tile,
                            par_split=ps, stats_in=s2, per_batch_w=True,
                            want_h=True)
    s3 = finalize_stats(s3p, R)
    h4, s4p = conv_bn_stage(h3, params['c4w'], params['c4b'], B=B, N=N,
                            row_tile=row_tile, par_split=ps, stats_in=s3,
                            want_h=True)
    s4 = finalize_stats(s4p, R)

    # conv5 (kernel_size=3, padding=1): BN+ReLU + shifts + 3 tap matmuls fused;
    # max-pool fused; only tiny halo rows are built wrapper-side.
    prev_halo, next_halo = _conv5_halos(h4, s4, B, N, row_tile)
    s5p, mx5p = conv5_stage(h4, s4, prev_halo, next_halo,
                            params['c5w_m1'], params['c5w_c'], params['c5w_p1'],
                            params['c5b'], B=B, N=N, row_tile=row_tile,
                            par_split=ps)
    s5 = finalize_stats(s5p, R)
    mx5 = _combine_max(mx5p, B, ps)                               # (B, 1024)

    # classification head (dropout masks are precomputed, training semantics).
    # TODO(synk): sample dropout with the on-chip PRNG (pltpu.prng_random_bits)
    # if wrapper-side RNG is not acceptable.
    if dropout_masks is None:
        m1 = jnp.ones((mx5.shape[0], 512), jnp.float32)
        m2 = jnp.ones((mx5.shape[0], 256), jnp.float32)
    else:
        m1, m2 = dropout_masks
    vmem = pl.BlockSpec(memory_space=pltpu.MemorySpace.VMEM)
    logits = pl.pallas_call(
        functools.partial(_pointnet_head_kernel, eps_pool=BN_EPS, eps_fc=FC_BN_EPS),
        out_shape=jax.ShapeDtypeStruct((B, params['classes']), jnp.float32),
        in_specs=[vmem] * 10,
        out_specs=vmem,
        compiler_params=pltpu.CompilerParams(vmem_limit_bytes=_vmem_limit()),
    )(mx5, s5, params['f1w'], params['f1b'], params['f2w'], params['f2b'],
      params['f3w'], params['f3b'], m1, m2)
    return logits, T2


# ---------------------------------------------------------------------------
# Parameter init (matches _init_module; weights stored (Cin, Cout), bf16).
# ---------------------------------------------------------------------------
def _xavier_uniform(key, fan_in, fan_out, shape):
    bound = math.sqrt(6.0 / (fan_in + fan_out))
    return jax.random.uniform(key, shape, jnp.float32, -bound, bound)


def _conv_weight(key, cin, cout, cin_pad=None, fan_in=None, fan_out=None):
    w = _xavier_uniform(key, fan_in or cin, fan_out or cout, (cin, cout))
    if cin_pad is not None and cin_pad > cin:
        w = jnp.pad(w, ((0, cin_pad - cin), (0, 0)))
    return w.astype(jnp.bfloat16)


def _zeros_bias(cout):
    return jnp.zeros((1, cout), jnp.float32)


def init_transform_params(key, K):
    Kp = max(K, 8)
    ks = jax.random.split(key, 5)
    p = {'K': K, 'Kp': Kp}
    p['w1'], p['b1'] = _conv_weight(ks[0], K, 64, Kp), _zeros_bias(64)
    p['w2'], p['b2'] = _conv_weight(ks[1], 64, 128), _zeros_bias(128)
    p['w3'], p['b3'] = _conv_weight(ks[2], 128, 1024), _zeros_bias(1024)
    p['fw1'], p['fb1'] = _conv_weight(ks[3], 1024, 512), _zeros_bias(512)
    p['fw2'], p['fb2'] = _conv_weight(ks[4], 512, 256), _zeros_bias(256)
    p['fw3'] = jnp.zeros((256, K * K), jnp.bfloat16)             # fc3 weight = 0
    p['fb3'] = jnp.eye(K, dtype=jnp.float32).reshape(1, K * K)   # bias = identity
    return p


def init_pointnet_params(key, classes):
    ks = jax.random.split(key, 10)
    p = {'classes': classes}
    p['tnet3'] = init_transform_params(ks[0], 3)
    p['tnet64'] = init_transform_params(ks[1], 64)
    p['c1w'], p['c1b'] = _conv_weight(ks[2], 3, 64, 8), _zeros_bias(64)
    p['c2w'], p['c2b'] = _conv_weight(ks[3], 64, 64), _zeros_bias(64)
    p['c3w'], p['c3b'] = _conv_weight(ks[4], 64, 64), _zeros_bias(64)
    p['c4w'], p['c4b'] = _conv_weight(ks[5], 64, 128), _zeros_bias(128)
    # Conv1d(128, 1024, 3, padding=1): xavier over the full (384, 1024) fan,
    # stored as three taps [n-1, n, n+1] for the fused conv5 kernel.
    w5 = _conv_weight(ks[6], 3 * 128, 1024, fan_in=3 * 128, fan_out=3 * 1024)
    p['c5w_m1'], p['c5w_c'], p['c5w_p1'] = w5[0:128], w5[128:256], w5[256:384]
    p['c5b'] = _zeros_bias(1024)
    p['f1w'], p['f1b'] = _conv_weight(ks[7], 1024, 512), _zeros_bias(512)
    p['f2w'], p['f2b'] = _conv_weight(ks[8], 512, 256), _zeros_bias(256)
    p['f3w'], p['f3b'] = _conv_weight(ks[9], 256, classes), _zeros_bias(classes)
    return p


# ---------------------------------------------------------------------------
# Pure-JAX reference of the same forward (for correctness checking).  It
# mirrors the kernel pipeline's bf16 activation storage (stats are computed
# from the f32 conv output, the stored/normalized value is bf16-rounded).
# ---------------------------------------------------------------------------
def _ref_dot(a, w, b):
    return jnp.dot(a.astype(jnp.bfloat16), w,
                   preferred_element_type=jnp.float32) + b


def _ref_stats(h):
    m = jnp.mean(h, axis=0, keepdims=True)
    v = jnp.maximum(jnp.mean(h * h, axis=0, keepdims=True) - m * m, 0.0)
    return m, v


def _ref_bn_relu(x, m, v, eps):
    return jnp.maximum((x - m) * jax.lax.rsqrt(v + eps), 0.0)


def _ref_round(h):
    return h.astype(jnp.bfloat16).astype(jnp.float32)


def _ref_apply_transform(z, T, B, N):
    C = z.shape[1]
    zt = jnp.einsum('bnc,bck->bnk', z.reshape(B, N, C), T)
    return zt.reshape(B * N, C)


def transform_net_reference(x, p, B, N):
    h = _ref_dot(x, p['w1'], p['b1'])
    m, v = _ref_stats(h); h = _ref_bn_relu(_ref_round(h), m, v, BN_EPS)
    h = _ref_dot(h, p['w2'], p['b2'])
    m, v = _ref_stats(h); h = _ref_bn_relu(_ref_round(h), m, v, BN_EPS)
    h = _ref_dot(h, p['w3'], p['b3'])
    m, v = _ref_stats(h); h = _ref_bn_relu(h, m, v, BN_EPS)
    pooled = jnp.max(h.reshape(B, N, -1), axis=1)
    g = _ref_dot(pooled, p['fw1'], p['fb1']); g = _bn_relu_rows(g, BN_EPS)
    g = _ref_dot(g, p['fw2'], p['fb2']);      g = _bn_relu_rows(g, BN_EPS)
    out = _ref_dot(g, p['fw3'], p['fb3'])
    return out.reshape(B, p['K'], p['K'])


def pointnet_reference(pc, p, m1, m2):
    B, _, N = pc.shape
    x8 = _points_major_pad8(pc)
    T1 = transform_net_reference(x8, p['tnet3'], B, N)
    z = _ref_apply_transform(x8, _pad_transform(T1, 8), B, N)
    h = _ref_dot(z, p['c1w'], p['c1b'])
    mu, var = _ref_stats(h); f = _ref_bn_relu(_ref_round(h), mu, var, BN_EPS)
    h = _ref_dot(f, p['c2w'], p['c2b'])
    mu, var = _ref_stats(h); f = _ref_bn_relu(_ref_round(h), mu, var, BN_EPS)
    T2 = transform_net_reference(f, p['tnet64'], B, N)
    z = _ref_apply_transform(f, T2, B, N)
    h = _ref_dot(z, p['c3w'], p['c3b'])
    mu, var = _ref_stats(h); f = _ref_bn_relu(_ref_round(h), mu, var, BN_EPS)
    h = _ref_dot(f, p['c4w'], p['c4b'])
    mu, var = _ref_stats(h); f = _ref_bn_relu(_ref_round(h), mu, var, BN_EPS)
    w5 = jnp.concatenate([p['c5w_m1'], p['c5w_c'], p['c5w_p1']], axis=0)
    x5 = _im2col_k3(f, B, N)
    h = _ref_dot(x5, w5, p['c5b'])
    mu, var = _ref_stats(h); f = _ref_bn_relu(h, mu, var, BN_EPS)
    pooled = jnp.max(f.reshape(B, N, -1), axis=1)
    g = _ref_dot(pooled, p['f1w'], p['f1b'])
    g = _bn_relu_rows(g, FC_BN_EPS) * m1
    g = _ref_dot(g, p['f2w'], p['f2b'])
    g = _bn_relu_rows(g, FC_BN_EPS) * m2
    return _ref_dot(g, p['f3w'], p['f3b']), T2


if __name__ == "__main__":
    # B=3 (odd) exercises the v7x parallel-axis split; small N keeps it quick.
    B, N, CLASSES = 3, 256, 10
    ROW_TILE = 64          # small demo tile; default is min(N, 1024) in real runs

    key = jax.random.PRNGKey(0)
    pkey, xkey, dkey = jax.random.split(key, 3)
    params = init_pointnet_params(pkey, CLASSES)
    pc = jax.random.normal(xkey, (B, 3, N), jnp.float32)

    # Dropout (p=0.3) masks for the training-mode head, sampled wrapper-side so
    # the run is deterministic and comparable with the pure-JAX reference.
    k1, k2 = jax.random.split(dkey)
    m1 = jax.random.bernoulli(k1, 0.7, (B, 512)).astype(jnp.float32) / 0.7
    m2 = jax.random.bernoulli(k2, 0.7, (B, 256)).astype(jnp.float32) / 0.7

    logits, t2 = pointnet_forward(pc, params, row_tile=ROW_TILE,
                                  dropout_masks=(m1, m2))
    logits = jax.block_until_ready(logits)

    assert logits.shape == (B, CLASSES), logits.shape
    assert t2.shape == (B, 64, 64), t2.shape
    assert bool(jnp.all(jnp.isfinite(logits)))

    # Cross-check the Pallas pipeline against the pure-JAX reference.
    ref_logits, ref_t2 = pointnet_reference(pc, params, m1, m2)
    tol = 0.1 * (1.0 + float(jnp.max(jnp.abs(ref_logits))))
    err = float(jnp.max(jnp.abs(logits - ref_logits)))
    assert err <= tol, f"kernel/reference mismatch: max|diff|={err} tol={tol}"
    assert bool(jnp.allclose(t2, ref_t2, atol=1e-2, rtol=1e-2))

    # Also validate the transform_net kernel path with a non-degenerate fc3
    # (at module init fc3 outputs the identity regardless of the input).
    x8 = _points_major_pad8(pc)
    chk = dict(params['tnet3'])
    chk['fw3'] = _conv_weight(jax.random.PRNGKey(123), 256, 9)
    chk['fb3'] = jnp.zeros((1, 9), jnp.float32)
    t_chk = transform_net_forward(x8, chk, B=B, N=N, row_tile=ROW_TILE)
    t_ref = transform_net_reference(x8, chk, B, N)
    t_tol = 0.1 * (1.0 + float(jnp.max(jnp.abs(t_ref))))
    t_err = float(jnp.max(jnp.abs(t_chk - t_ref)))
    assert t_err <= t_tol, f"transform_net mismatch: {t_err} > {t_tol}"

    print("KERNEL_OK")
</pallas_src>

<mosaic_0001>
module attributes {stable_mosaic.version = 11 : i64} {
  func.func @kernel(%arg0: i32, %arg1: i32, %arg2: memref<64x8xf32, #tpu.memory_space<vmem>>, %arg3: memref<8x64xbf16, #tpu.memory_space<vmem>>, %arg4: memref<1x64xf32, #tpu.memory_space<vmem>>, %arg5: memref<64x64xbf16, #tpu.memory_space<vmem>>, %arg6: memref<1x8x64xf32, #tpu.memory_space<vmem>>) attributes {dimension_semantics = [#tpu.dimension_semantics<parallel>, #tpu.dimension_semantics<arbitrary>], iteration_bounds = array<i64: 6, 2>, scalar_prefetch = 0 : i64, scratch_operands = 0 : i64, tpu.core_type = #tpu.core_type<tc>, window_params = [{transform_indices = @transform_0, window_bounds = array<i64: 64, 8>}, {pipeline_mode = #tpu.pipeline_mode<synchronous>, transform_indices = @transform_1, window_bounds = array<i64: 8, 64>}, {pipeline_mode = #tpu.pipeline_mode<synchronous>, transform_indices = @transform_2, window_bounds = array<i64: 1, 64>}, {transform_indices = @transform_3, window_bounds = array<i64: 64, 64>}, {transform_indices = @transform_4, window_bounds = array<i64: 1, 8, 64>}]} {
    %c0 = arith.constant 0 : index
    %c0_0 = arith.constant 0 : index
    %0 = vector.load %arg2[%c0, %c0_0] : memref<64x8xf32, #tpu.memory_space<vmem>>, vector<64x8xf32>
    %1 = arith.truncf %0 : vector<64x8xf32> to vector<64x8xbf16>
    %c0_1 = arith.constant 0 : index
    %c0_2 = arith.constant 0 : index
    %2 = vector.load %arg3[%c0_1, %c0_2] : memref<8x64xbf16, #tpu.memory_space<vmem>>, vector<8x64xbf16>
    %cst = arith.constant dense<0.000000e+00> : vector<64x64xf32>
    %3 = tpu.matmul %1, %2, %cst {dimension_numbers = #tpu.dot_dimension_numbers<[1], [0], [0], [1], [0, 0, 1, 1], [], []>} : vector<64x8xbf16>, vector<8x64xbf16>, vector<64x64xf32> -> vector<64x64xf32>
    %c0_3 = arith.constant 0 : index
    %c0_4 = arith.constant 0 : index
    %4 = vector.load %arg4[%c0_3, %c0_4] : memref<1x64xf32, #tpu.memory_space<vmem>>, vector<1x64xf32>
    %5 = vector.broadcast %4 : vector<1x64xf32> to vector<64x64xf32>
    %6 = arith.addf %3, %5 : vector<64x64xf32>
    %7 = arith.truncf %6 : vector<64x64xf32> to vector<64x64xbf16>
    %c0_5 = arith.constant 0 : index
    %c0_6 = arith.constant 0 : index
    %8 = vector.load %arg5[%c0_5, %c0_6] : memref<64x64xbf16, #tpu.memory_space<vmem>>, vector<64x64xbf16>
    tpu.vector_store %arg5[%c0_5, %c0_6], %7 {strides = array<i32>} : memref<64x64xbf16, #tpu.memory_space<vmem>>, vector<64x64xbf16>,
    %c0_i32 = arith.constant 0 : i32
    %9 = arith.cmpi eq, %arg1, %c0_i32 : i32
    %10 = arith.extui %9 : i1 to i32
    %c0_i32_7 = arith.constant 0 : i32
    %11 = arith.cmpi ne, %10, %c0_i32_7 : i32
    scf.if %11 {
      %cst_16 = arith.constant 0.000000e+00 : f32
      %24 = vector.broadcast %cst_16 : f32 to vector<8x64xf32>
      %c0_17 = arith.constant 0 : index
      %c0_18 = arith.constant 0 : index
      %c0_19 = arith.constant 0 : index
      %25 = vector.load %arg6[%c0_17, %c0_18, %c0_19] : memref<1x8x64xf32, #tpu.memory_space<vmem>>, vector<1x8x64xf32>
      %26 = vector.shape_cast %25 : vector<1x8x64xf32> to vector<8x64xf32>
      %27 = vector.shape_cast %24 : vector<8x64xf32> to vector<1x8x64xf32>
      tpu.vector_store %arg6[%c0_17, %c0_18, %c0_19], %27 {strides = array<i32>} : memref<1x8x64xf32, #tpu.memory_space<vmem>>, vector<1x8x64xf32>,
    } else {
    }
    %cst_8 = arith.constant dense<0.000000e+00> : vector<64xf32>
    %12 = vector.multi_reduction <add>, %6, %cst_8 [0] : vector<64x64xf32> to vector<64xf32>
    %13 = vector.shape_cast %12 : vector<64xf32> to vector<1x64xf32>
    %14 = arith.mulf %6, %6 : vector<64x64xf32>
    %cst_9 = arith.constant dense<0.000000e+00> : vector<64xf32>
    %15 = vector.multi_reduction <add>, %14, %cst_9 [0] : vector<64x64xf32> to vector<64xf32>
    %16 = vector.shape_cast %15 : vector<64xf32> to vector<1x64xf32>
    %17 = tpu.concatenate %13, %16 in 0 : vector<1x64xf32>, vector<1x64xf32> -> vector<2x64xf32>
    %c0_10 = arith.constant 0 : index
    %c0_11 = arith.constant 0 : index
    %c0_12 = arith.constant 0 : index
    %18 = vector.load %arg6[%c0_10, %c0_11, %c0_12] : memref<1x8x64xf32, #tpu.memory_space<vmem>>, vector<1x2x64xf32>
    %19 = vector.shape_cast %18 : vector<1x2x64xf32> to vector<2x64xf32>
    %20 = arith.addf %19, %17 : vector<2x64xf32>
    %c0_13 = arith.constant 0 : index
    %c0_14 = arith.constant 0 : index
    %c0_15 = arith.constant 0 : index
    %21 = vector.load %arg6[%c0_13, %c0_14, %c0_15] : memref<1x8x64xf32, #tpu.memory_space<vmem>>, vector<1x2x64xf32>
    %22 = vector.shape_cast %21 : vector<1x2x64xf32> to vector<2x64xf32>
    %23 = vector.shape_cast %20 : vector<2x64xf32> to vector<1x2x64xf32>
    tpu.vector_store %arg6[%c0_13, %c0_14, %c0_15], %23 {strides = array<i32>} : memref<1x8x64xf32, #tpu.memory_space<vmem>>, vector<1x2x64xf32>,
    return
  }
  func.func @transform_0(%arg0: i32, %arg1: i32) -> (i32, i32) {
    %c2_i32 = arith.constant 2 : i32
    %0 = arith.muli %arg0, %c2_i32 : i32
    %1 = arith.addi %0, %arg1 : i32
    %c0_i32 = arith.constant 0 : i32
    %c0_i32_0 = arith.constant 0 : i32
    return %1, %c0_i32 : i32, i32
  }
  func.func @transform_1(%arg0: i32, %arg1: i32) -> (i32, i32) {
    %c0_i32 = arith.constant 0 : i32
    %c0_i32_0 = arith.constant 0 : i32
    %c0_i32_1 = arith.constant 0 : i32
    return %c0_i32, %c0_i32_0 : i32, i32
  }
  func.func @transform_2(%arg0: i32, %arg1: i32) -> (i32, i32) {
    %c0_i32 = arith.constant 0 : i32
    %c0_i32_0 = arith.constant 0 : i32
    %c0_i32_1 = arith.constant 0 : i32
    return %c0_i32, %c0_i32_0 : i32, i32
  }
  func.func @transform_3(%arg0: i32, %arg1: i32) -> (i32, i32) {
    %c2_i32 = arith.constant 2 : i32
    %0 = arith.muli %arg0, %c2_i32 : i32
    %1 = arith.addi %0, %arg1 : i32
    %c0_i32 = arith.constant 0 : i32
    %c0_i32_0 = arith.constant 0 : i32
    return %1, %c0_i32 : i32, i32
  }
  func.func @transform_4(%arg0: i32, %arg1: i32) -> (i32, i32, i32) {
    %c0_i32 = arith.constant 0 : i32
    %c0_i32_0 = arith.constant 0 : i32
    %c0_i32_1 = arith.constant 0 : i32
    return %arg0, %c0_i32, %c0_i32_0 : i32, i32, i32
  }
}

</mosaic_0001>

<bundles_post_ra>
// kernel: tpu_custom_call.1
= control target key start
LH: loop header
LB: loop body
LE: loop exit
PB: predicated region body
PF: predicated region fallthrough
CT: control target
= control target key end

     0   :  { %s1564_s0 = inlined_call_operand.hbm [shape: f32[768,8], index: 0, kind: input, shape index: {}]   ;;  %s1565_s1 = inlined_call_operand.hbm [shape: bf16[8,64], index: 1, kind: input, shape index: {}]   ;;  %s1566_s2 = inlined_call_operand.hbm [shape: f32[1,64], index: 2, kind: input, shape index: {}]   ;;  %s1567_s3 = inlined_call_operand.hbm [shape: bf16[768,64], index: 3, kind: output, shape index: {0}]   ;;  %s1568_s4 = inlined_call_operand.hbm [shape: f32[6,8,64], index: 4, kind: output, shape index: {1}]  }
   0x1   :  { %1587 = sst [smem:[#allocation22_spill]] %s1565_s1 }
   0x2   :  { %1588 = sst [smem:[#allocation23_spill]] %s1566_s2 }
   0x3   :  { %1589 = sst [smem:[#allocation24_spill]] %s1567_s3 }
   0x4   :  { %1590 = sst [smem:[#allocation25_spill]] %s1568_s4 }
   0x5   :  { %10 = vsyncpa [#allocation3], 0 }
   0x6   :  { %12 = vsyncpa [#allocation3 + $0x1], 0 }
   0x7   :  { %13 = vsyncpa [#allocation6], 0 }
   0x8   :  { %14 = vsyncpa [#allocation4], 0 }
   0x9   :  { %16 = vsyncpa [#allocation4 + $0x1], 0 }
   0xa   :  { %17 = vsyncpa [#allocation10], 0 }
   0xb   :  { %19 = vsyncpa [#allocation10 + $0x1], 0  ;;  %s1145_s15 = smov 0   ;;  %s1147_s16 = smov 0  }
   0xc   :  { %s1149_s17 = smov 0   ;;  %s1151_s18 = smov 0  }
   0xd   :  { %s1153_s19 = smov 0   ;;  %s1155_s20 = smov 0  }
   0xe   :  { %s1157_s21 = smov 0   ;;  %s1159_s22 = smov 0  }
   0xf   :  { %s1161_s23 = smov 0   ;;  %s1163_s24 = smov 0  }
  0x10   :  { %s1165_s25 = smov 0  }
  0x11 LB: > { %1591 = sst [smem:[#allocation15_spill]] %s1068_s15  ;;  %s660_s26 = sadd.s32 4294967295, %s1108_s25   ;;  %s1108_s25 = sphi %s1165_s25, %s25_s25   ;;  %s1104_s24 = sphi %s1163_s24, %s1638_s24   ;;  %s1100_s23 = sphi %s1161_s23, %s1637_s23   ;;  %s1096_s22 = sphi %s1159_s22, %s1636_s22   ;;  %s1092_s21 = sphi %s1157_s21, %s1629_s21   ;;  %s1088_s20 = sphi %s1155_s20, %s1635_s20   ;;  %s1084_s19 = sphi %s1153_s19, %s1634_s19   ;;  %s1080_s18 = sphi %s1151_s18, %s1633_s18   ;;  %s1076_s17 = sphi %s1149_s17, %s1632_s17   ;;  %s1072_s16 = sphi %s1147_s16, %s1631_s16   ;;  %s1068_s15 = sphi %s1145_s15, %s1630_s15  }
  0x12   : > { %1592 = sst [smem:[#allocation16_spill]] %s1080_s18  ;;  %s661_s27 = sadd.s32 4294967294, %s1108_s25  }
  0x13   : > { %1593 = sst [smem:[#allocation17_spill]] %s1100_s23  ;;  %p55_p0 = scmp.ne.s32.totalorder %s1088_s20, %s1084_s19 }
  0x14   : > { %1594 = sst [smem:[#allocation18_spill]] %s1108_s25  ;;  %p56_p1 = scmp.eq.s32.totalorder %s1108_s25, 0 }
  0x15   : > { %p61_p2 = scmp.ne.s32.totalorder %s1084_s19, %s1080_s18  ;;  %p1207_p3 = scmp.eq.s32.totalorder %s660_s26, 0 }
  0x16   : > { %p1211_p4 = por %p56_p1, %p55_p0  ;;  %p131_p5 = scmp.eq.s32.totalorder %s660_s26, 11 }
  0x17   : > { %s1595_s28 = scalar_select %p1207_p3, 1, 0 }
  0x18   : > { %p1217_p6 = por %p1207_p3, %p61_p2  ;;  %p137_p7 = scmp.eq.s32.totalorder %s661_s27, 11 }
  0x19   : > { %p1221_p8 = por %p131_p5, %p55_p0  ;;  %p156_p10 = scmp.ne.s32.totalorder %s1076_s17, %s1072_s16 }
  0x1a   : > { %s1597_s30 = scalar_select %p1217_p6, 1, 0 }
  0x1b   : > { %s1598_s5 = scalar_select %p1221_p8, 1, 0 }
  0x1c   : > { %p1226_p9 = por %p137_p7, %p61_p2  ;;  %p162_p11 = scmp.ne.s32.totalorder %s1072_s16, %s1068_s15 }
  0x1d   : > { %p666_p12 = scmp.ge.s32.totalorder %s1108_s25, 1  ;;  %p1235_p13 = por %p156_p10, %p131_p5 }
  0x1e   : > { %s1599_s7 = scalar_select %p1226_p9, 1, 0 }
  0x1f   : > { %s1601_s8 = scalar_select %p1235_p13, 1, 0 }
  0x20   : > { %1600 = sst [smem:[#allocation19_spill]] %s1599_s7  ;;  %p170_p1 = scmp.lt.s32.totalorder %s1108_s25, 13 }
  0x21   : > { %1602 = sst [smem:[#allocation20_spill]] %s1601_s8  ;;  %p1240_p6 = por %p162_p11, %p137_p7 }
  0x22   : > { %p1244_p0 = pnand %p666_p12, %p170_p1  ;;  %s1110_s11 = smov [#allocation5]  }
  0x23   : > { %s1603_s9 = scalar_select %p1240_p6, 1, 0 }
  0x24   : > { %s1605_s10 = scalar_select %p1244_p0, 1, 0 }
  0x25   : > { %1604 = sst [smem:[#allocation21_spill]] %s1603_s9  ;;  %s183_s12 = sshll.u32 %s1110_s11, 4  ;;  %s184_s12 = int_to_ptr.vmem [resolvable:$true] %s183_s12 }
  0x26   : > { %p745_p2 = pneg %p1244_p0  ;;  %p765_p9 = scmp.lt.s32.totalorder %s1108_s25, 12 }
  0x27   : > { %s1111_s14 = smov [#allocation7]   ;;  %s1608_s1 = sld [smem:[#allocation22_spill]] }
  0x28   : > { %p1253_p5 = pnand %p745_p2, %p1207_p3  ;;  %s194_s26 = sshll.u32 %s1111_s14, 4  ;;  %s1263_s26 = int_to_ptr.vmem [resolvable:$true] %s194_s26 }
  0x29   : > { %p1259_p7 = pnand %p765_p9, %p1211_p4 }
  0x2a   : > { %p866_p11 = pneg %p1253_p5 }
  0x2b   : > { %s1607_s27 = scalar_select %p1259_p7, 1, 0 }
  0x2d   : > { %s864_s9 = scalar_lea.hbm %s1608_s1, 64 }
  0x2e   : > { %p865_p10 = scmp.ne.s32.totalorder %s1608_s1, %s864_s9  ;;  %p871_p4 = scmp.lt.u32.totalorder %s864_s9, %s1608_s1 }
  0x30   : > { %p867_p12 = pnand %p866_p11, %p865_p10 }
  0x32   : > { %p868_p1 = pneg %p867_p12 }
  0x34   : > { %p873_p9 = pnand %p871_p4, %p868_p1 }
  0x36   : > { %876 = shalt.err (!%p873_p9)
}
  0x37   : > { %s877_s18 = scalar_lea.vmem %s184_s12, 64  ;;  %p885_p8 = scmp.lt.s32.totalorder %s184_s12, %s184_s12 }
  0x38   : > { %p878_p2 = scmp.ne.s32.totalorder %s184_s12, %s877_s18  ;;  %p886_p3 = scmp.lt.s32.totalorder %s877_s18, %s877_s18 }
  0x3a   : > { %p880_p6 = pnand %p878_p2, %p866_p11  ;;  %p887_p0 = por %p886_p3, %p885_p8 }
  0x3c   : > { %p881_p13 = pneg %p880_p6 }
  0x3e   : > { %p888_p7 = pnand %p887_p0, %p881_p13 }
  0x40   : > { %891 = shalt.err (!%p888_p7)
}
  0x41   : > { %748 = dma.hbm_to_vmem [thread:$0]  (!%p1253_p5), %s1608_s1, 64, %s184_s12, [#allocation6]  }
  0x42   : > { %s1609_s2 = sld [smem:[#allocation23_spill]] }
  0x48   : > { %s892_s11 = scalar_lea.hbm %s1609_s2, 16 }
  0x49   : > { %p893_p6 = scmp.ne.s32.totalorder %s1609_s2, %s892_s11  ;;  %p899_p13 = scmp.lt.u32.totalorder %s892_s11, %s1609_s2 }
  0x4b   : > { %p895_p3 = pnand %p893_p6, %p866_p11 }
  0x4d   : > { %p896_p8 = pneg %p895_p3 }
  0x4f   : > { %p901_p0 = pnand %p899_p13, %p896_p8 }
  0x51   : > { %904 = shalt.err (!%p901_p0)
}
  0x52   : > { %s905_s12 = scalar_lea.vmem %s1263_s26, 16  ;;  %s912_s15 = scalar_lea.vmem %s1263_s26, 32 }
  0x53   : > { %p906_p7 = scmp.ne.s32.totalorder %s1263_s26, %s905_s12  ;;  %p913_p1 = scmp.lt.s32.totalorder %s1263_s26, %s1263_s26 }
  0x54   : > { %p914_p4 = scmp.lt.s32.totalorder %s912_s15, %s905_s12 }
  0x55   : > { %p908_p10 = pnand %p906_p7, %p866_p11 }
  0x56   : > { %p915_p9 = por %p914_p4, %p913_p1 }
  0x57   : > { %p909_p12 = pneg %p908_p10 }
  0x59   : > { %p916_p2 = pnand %p915_p9, %p909_p12 }
  0x5b   : > { %919 = shalt.err (!%p916_p2)
}
  0x5c   : > { %751 = dma.hbm_to_vmem [thread:$0]  (!%p1253_p5), %s1609_s2, 16, %s1263_s26, [#allocation6]  }
  0x5d   : > { %s34_s7 = sadd.s32 1, %s1100_s23  ;;  %s37_s9 = sadd.s32 1, %s1104_s24 }
  0x5e   : > { %p35_p11 = scmp.ge.s32.totalorder %s34_s7, 2  ;;  %s662_s11 = sshll.u32 %s1104_s24, 1 }
  0x5f   : > { %s42_s29 = sadd.s32 %s1100_s23, %s662_s11  ;;  %s48_s14 = sadd.s32 1, %s1088_s20 }
  0x60   : > { %s1640_s7 = smov (%p35_p11, %s34_s7), 0  ;;  %s1642_s9 = smov (!%p35_p11, %s37_s9), %s1104_s24 }
  0x61   : > { %s205_s13 = sand.u32 1, %s1088_s20   ;;  %s702_s18 = sshll.u32 %s42_s29, 10 }
  0x62   : > { %p39_p6 = scmp.ge.s32.totalorder %s1642_s9, 6  ;;  %s670_s12 = sshll.u32 %s205_s13, 6 }
  0x63   : > { %s1325_s25 = scalar_lea.hbm %s1564_s0, %s702_s18  ;;  %s209_s23 = scalar_lea.vmem [#allocation2], %s670_s12 }
  0x64   : > { %s1644_s9 = smov (%p39_p6, %s1642_s9), 0  ;;  %s218_s4 = sshll.u32 %s209_s23, 4  ;;  %s1333_s4 = int_to_ptr.vmem [resolvable:$true] %s218_s4 }
  0x65   : > { %s663_s6 = sshll.u32 %s1644_s9, 1  ;;  %s143_s11 = ssub.s32 %s1104_s24, %s1644_s9 }
  0x66   : > { %s44_s1 = sadd.s32 %s663_s6, %s1640_s7  ;;  %p144_p5 = scmp.eq.s32.totalorder %s143_s11, 0 }
  0x67   : > { %s45_s2 = ssub.s32 %s42_s29, %s44_s1  ;;  %s1610_s18 = sadd.s32 1, %s1076_s17 }
  0x68   : > { %p46_p3 = scmp.eq.s32.totalorder %s45_s2, 0  ;;  %s1343_s8 = scalar_lea.sflag [#allocation3], %s205_s13 }
  0x69   : > { %s1338_s15 = scalar_select %p144_p5, %s1076_s17, %s1610_s18  }
  0x6a   : > { %s1341_s26 = scalar_select %p46_p3, %s1088_s20, %s48_s14  }
  0x6b   : > { %s920_s3 = scalar_lea.hbm %s1325_s25, 1024  ;;  %p1611_p13 = scmp.ne.s32.totalorder %s1607_s27, 0 }
  0x6c   : > { %p921_p8 = scmp.ne.s32.totalorder %s1325_s25, %s920_s3  ;;  %s925_s2 = scalar_lea.hbm %s1564_s0, 12288 }
  0x6d   : > { %p922_p0 = pneg %p1611_p13  ;;  %p926_p12 = scmp.lt.u32.totalorder %s1325_s25, %s1564_s0 }
  0x6e   : > { %p927_p1 = scmp.lt.u32.totalorder %s925_s2, %s920_s3  ;;  %p929_p9 = scmp.lt.u32.totalorder %s920_s3, %s1325_s25 }
  0x6f   : > { %p923_p7 = pnand %p922_p0, %p921_p8 }
  0x70   : > { %p928_p4 = por %p927_p1, %p926_p12 }
  0x71   : > { %p924_p10 = pneg %p923_p7 }
  0x72   : > { %p930_p2 = por %p929_p9, %p928_p4 }
  0x74   : > { %p931_p11 = pnand %p930_p2, %p924_p10 }
  0x76   : > { %934 = shalt.err (!%p931_p11)
}
  0x77   : > { %s935_s14 = scalar_lea.vmem %s1333_s4, 1024  ;;  %s1112_s13 = smov [#allocation2]  }
  0x78   : > { %p936_p6 = scmp.ne.s32.totalorder %s1333_s4, %s935_s14  ;;  %s940_s6 = sshll.u32 %s1112_s13, 4  ;;  %s941_s6 = int_to_ptr.vmem [resolvable:$false] %s940_s6 }
  0x79   : > { %s942_s11 = scalar_lea.vmem %s941_s6, 2048  ;;  %p943_p8 = scmp.lt.s32.totalorder %s1333_s4, %s941_s6 }
  0x7a   : > { %p938_p5 = pnand %p936_p6, %p922_p0  ;;  %p944_p7 = scmp.lt.s32.totalorder %s942_s11, %s935_s14 }
  0x7c   : > { %p939_p3 = pneg %p938_p5  ;;  %p945_p12 = por %p944_p7, %p943_p8 }
  0x7e   : > { %p946_p1 = pnand %p945_p12, %p939_p3 }
  0x80   : > { %949 = shalt.err (!%p946_p1)
}
  0x81   : > { %s1113_s3 = smov 128   ;;  %s1114_s18 = smov 8  }
  0x82   : > { %755 = dma.hbm_to_vmem [thread:$0]  (!%p1611_p13), %s1325_s25, 1024, %s1333_s4, %s1343_s8, %s1113_s3, %s1113_s3, %s1114_s18  }
  0x83   : > { %p1612_p0 = scmp.ne.s32.totalorder %s1605_s10, 0 }
  0x84   : > { %s1374_s1 = sand.u32 (!%p1612_p0), 1, %s1084_s19   ;;  %p1613_p10 = scmp.ne.s32.totalorder (!%p1612_p0), %s1597_s30, 0 }
  0x85   : > { %230 = sbr.rel (%p1612_p0) target bundleno = 439 (0x1b7), region = 32  ;;  %s675_s23 = sshll.u32 (!%p1612_p0), %s1374_s1, 6 }
  0x86   : > { %s233_s2 = scalar_lea.sflag (!%p1612_p0), [#allocation3], %s1374_s1  ;;  %s236_s29 = scalar_lea.vmem (!%p1612_p0), [#allocation2], %s675_s23 }
  0x8c   : > { %1051 = dma.done.wait (%p1613_p10), %s233_s2, 1024  }
  0x8d   : > { %1053 = vsyncadd (%p1613_p10), %s233_s2, 4294966272  ;;  %p1614_p4 = scmp.ne.s32.totalorder %s1595_s28, 0 }
  0x8f   : > { %1055 = dma.done.wait (%p1614_p4), [#allocation6], 80  }
  0x90   : > { %1057 = vsyncadd (%p1614_p4), [#allocation6], 4294967216  ;;  %s271_s4 = sand.u32 1, %s1072_s16   ;;  %vm314_vm0 = vcmask 1043456   ;;  %v293_v0 = vld [vmem:[#allocation5] sm:$0xf] }
  0x91   : > { %s1389_s8 = sshll.u32 %s271_s4, 3  ;;  %v281_v1 = vld [vmem:[%s236_s29] sm:$0xff]  ;;  %v282_v2 = vld [vmem:[%s236_s29 + $0x8] sm:$0xff]  ;;  %vm301_vm1 = vcmask 64512   ;;  %729 = vmatprep.subr.msk.bf16.mxu0 %vm314_vm0, %v293_v0  ;;  %730 = vmatprep.subr.msk.bf16.mxu1 %vm314_vm0, %v293_v0  ;;  %v316_v3 = vsel %vm314_vm0, %v293_v0, 0  ;;  %v283_v7 = vld [vmem:[%s236_s29 + $0x10] sm:$0xff] }
  0x92   : > { %v289_v4 = vpack.c.bf16 %v282_v2, %v281_v1  ;;  %v285_v5 = vld [vmem:[%s236_s29 + $0x20] sm:$0xff]  ;;  %v286_v6 = vld [vmem:[%s236_s29 + $0x28] sm:$0xff]  ;;  %718 = vmatpush3.bf16.msra.mxu0 %v316_v3  ;;  %728 = vmatpush3.bf16.msra.mxu1 %v316_v3  ;;  %v284_v9 = vld [vmem:[%s236_s29 + $0x18] sm:$0xff]  ;;  %s678_s28 = sshll.u32 %s1374_s1, 5  ;;  %vm415_vm2 = vcmask 519168   ;;  %s1427_s10 = scalar_lea.vmem [#allocation9], %s1389_s8 }
  0x93   : > { %v291_v8 = vpack.c.bf16 %v286_v6, %v285_v5  ;;  %v287_v10 = vld [vmem:[%s236_s29 + $0x30] sm:$0xff]  ;;  %v288_v11 = vld [vmem:[%s236_s29 + $0x38] sm:$0xff]  ;;  %v290_v12 = vpack.c.bf16 %v284_v9, %v283_v7  ;;  %v680_v14 = vld [vmem:[#allocation7] ss:$0 sm:$0xff]  ;;  %s1404_s30 = scalar_lea.vmem [#allocation8], %s678_s28  ;;  %p693_p13 = scmp.ne.s32.totalorder %s1092_s21, 0 }
  0x94   : > { %719 = vmatprep.mubr.msk.bf16.mxu0 %vm301_vm1, %v289_v4  ;;  %v292_v13 = vpack.c.bf16 %v288_v11, %v287_v10  ;;  %vm428_vm3 = vcmask (!%p693_p13), 523264   ;;  %v1115_v39 = vmov (!%p693_p13), 0.0  }
  0x95   : > { %723 = vmatprep.mubr.msk.bf16.mxu1 %vm301_vm1, %v291_v8  ;;  %720 = vmatmul.mubr.msk.bf16.vlgmr.msra.gmra.mrb[0].mxu0 %vm301_vm1, %v290_v12  ;;  %429 = vst.msk [vmem:[%s1427_s10] sm:$0xff] (!%p693_p13), %vm428_vm3, %v1115_v39 }
  0x96   : > { %724 = vmatmul.mubr.msk.bf16.vlgmr.msra.gmra.mrb[0].mxu1 %vm301_vm1, %v292_v13 }
 0x168   : > { %v721_v15 = vpop.f32.mrb[0].mxu0 }
 0x169   : > { %v725_v16 = vpop.f32.mrb[0].mxu1  ;;  %v361_v17 = vadd.f32 %v721_v15, %v680_v14  ;;  %v352_v19 = vpop.f32.mrb[1].mxu0 }
 0x16a   : > { %v1396_v18 = vadd.f32 %v725_v16, %v680_v14  ;;  %v368_v20 = vpop.f32.mrb[1].mxu1  ;;  %v353_v21 = vadd.f32 %v680_v14, %v352_v19  ;;  %v722_v23 = vpop.f32.mrb[2].mxu0 }
 0x16b   : > { %v369_v22 = vadd.f32 %v680_v14, %v368_v20  ;;  %v726_v24 = vpop.f32.mrb[2].mxu1  ;;  %v705_v25 = vpack.c.bf16 %v361_v17, %v361_v17  ;;  %v364_v27 = vadd.f32 %v722_v23, %v680_v14  ;;  %v355_v29 = vpop.f32.mrb[3].mxu0  ;;  %427 = sbr.rel (%p693_p13) target bundleno = 370 (0x172), region = 48 }
 0x16c   : > { %v709_v26 = vpack.c.bf16 %v1396_v18, %v1396_v18  ;;  %v1400_v28 = vadd.f32 %v726_v24, %v680_v14  ;;  %v371_v30 = vpop.f32.mrb[3].mxu1  ;;  %v703_v31 = vpack.c.bf16 %v353_v21, %v353_v21  ;;  %v356_v33 = vadd.f32 %v680_v14, %v355_v29 }
 0x16d   : > { %v707_v32 = vpack.c.bf16 %v369_v22, %v369_v22  ;;  %v1402_v34 = vadd.f32 %v680_v14, %v371_v30  ;;  %418 = vst.msk [vmem:[%s1404_s30 + $0x8] sm:$0xf] %vm415_vm2, %v705_v25  ;;  %v706_v35 = vpack.c.bf16 %v364_v27, %v364_v27 }
 0x16e   : > { %422 = vst.msk [vmem:[%s1404_s30 + $0x18] sm:$0xf] %vm415_vm2, %v709_v26  ;;  %v710_v36 = vpack.c.bf16 %v1400_v28, %v1400_v28  ;;  %416 = vst.msk [vmem:[%s1404_s30] sm:$0xf] %vm415_vm2, %v703_v31  ;;  %v704_v37 = vpack.c.bf16 %v356_v33, %v356_v33 }
 0x16f   : > { %420 = vst.msk [vmem:[%s1404_s30 + $0x10] sm:$0xf] %vm415_vm2, %v707_v32  ;;  %v708_v38 = vpack.c.bf16 %v1402_v34, %v1402_v34  ;;  %419 = vst.msk [vmem:[%s1404_s30 + $0xc] sm:$0xf] %vm415_vm2, %v706_v35 }
 0x170   : > { %423 = vst.msk [vmem:[%s1404_s30 + $0x1c] sm:$0xf] %vm415_vm2, %v710_v36  ;;  %417 = vst.msk [vmem:[%s1404_s30 + $0x4] sm:$0xf] %vm415_vm2, %v704_v37 }
 0x171   : > { %421 = vst.msk [vmem:[%s1404_s30 + $0x14] sm:$0xf] %vm415_vm2, %v708_v38 }
 0x172 PF: > { %vm430_vm4 = vcmask 523264   ;;  %v452_v40 = vmul.f32 %v353_v21, %v353_v21  ;;  %v453_v41 = vmul.f32 %v356_v33, %v356_v33  ;;  %s696_s27 = sshll.u32 %s1096_s22, 1  ;;  %v454_v45 = vmul.f32 %v361_v17, %v361_v17  ;;  %s508_s12 = sshll.u32 %s1404_s30, 4  ;;  %s1437_s12 = int_to_ptr.vmem [resolvable:$true] %s508_s12 }
 0x173   : > { %v431_v42 = vsel %vm430_vm4, %v353_v21, 0.0  ;;  %v432_v43 = vsel %vm430_vm4, %v356_v33, 0.0  ;;  %v434_v44 = vsel %vm430_vm4, %v361_v17, 0.0  ;;  %s501_s25 = sadd.s32 %s1092_s21, %s696_s27  ;;  %v436_v47 = vsel %vm430_vm4, %v364_v27, 0.0  ;;  %s1615_s11 = sld [smem:[#allocation24_spill]] }
 0x174   : > { %v433_v46 = vadd.f32 %v432_v43, %v431_v42  ;;  %s711_s14 = sshll.u32 %s501_s25, 9  ;;  %v455_v48 = vmul.f32 %v364_v27, %v364_v27  ;;  %v460_v50 = vsel %vm430_vm4, %v452_v40, 0.0  ;;  %v438_v51 = vsel %vm430_vm4, %v369_v22, 0.0  ;;  %s488_s21 = scalar_lea.sflag [#allocation4], %s1374_s1 }
 0x175   : > { %v456_v52 = vmul.f32 %v369_v22, %v369_v22  ;;  %v461_v53 = vsel %vm430_vm4, %v453_v41, 0.0  ;;  %v463_v54 = vsel %vm430_vm4, %v454_v45, 0.0  ;;  %s950_s18 = scalar_lea.vmem %s1437_s12, 512  ;;  %p1616_p2 = scmp.ne.s32.totalorder %s1598_s5, 0 }
 0x176   : > { %v435_v49 = vadd.f32 %v434_v44, %v433_v46  ;;  %p951_p9 = scmp.ne.s32.totalorder %s1437_s12, %s950_s18  ;;  %s1116_s23 = smov [#allocation8]  }
 0x177   : > { %s954_s2 = sshll.u32 %s1116_s23, 4  ;;  %s955_s2 = int_to_ptr.vmem [resolvable:$false] %s954_s2 }
 0x178   : > { %p952_p11 = pnand %p951_p9, %p1616_p2  ;;  %s956_s29 = scalar_lea.vmem %s955_s2, 1024 }
 0x179   : > { %s1443_s3 = scalar_lea.hbm %s1615_s11, %s711_s14  ;;  %p957_p5 = scmp.lt.s32.totalorder %s1437_s12, %s955_s2 }
 0x17a   : > { %p953_p6 = pneg %p952_p11  ;;  %p958_p3 = scmp.lt.s32.totalorder %s956_s29, %s950_s18 }
 0x17c   : > { %p959_p8 = por %p958_p3, %p957_p5 }
 0x17e   : > { %p960_p7 = pnand %p959_p8, %p953_p6 }
 0x180   : > { %963 = shalt.err (!%p960_p7)
}
 0x181   : > { %s964_s8 = scalar_lea.hbm %s1443_s3, 512  ;;  %s968_s27 = scalar_lea.hbm %s1615_s11, 6144 }
 0x182   : > { %p965_p12 = scmp.ne.s32.totalorder %s1443_s3, %s964_s8  ;;  %p969_p10 = scmp.lt.u32.totalorder %s1443_s3, %s1615_s11 }
 0x183   : > { %p970_p4 = scmp.lt.u32.totalorder %s968_s27, %s964_s8  ;;  %p972_p9 = scmp.lt.u32.totalorder %s964_s8, %s1443_s3 }
 0x184   : > { %p966_p1 = pnand %p965_p12, %p1616_p2 }
 0x185   : > { %p971_p13 = por %p970_p4, %p969_p10 }
 0x186   : > { %p967_p0 = pneg %p966_p1 }
 0x187   : > { %p973_p11 = por %p972_p9, %p971_p13 }
 0x189   : > { %p974_p6 = pnand %p973_p11, %p967_p0 }
 0x18b   : > { %977 = shalt.err (!%p974_p6)
}
 0x18c   : > { %s1117_s13 = smov 64   ;;  %s1118_s6 = smov 4   ;;  %v437_v55 = vadd.f32 %v436_v47, %v435_v49  ;;  %v462_v56 = vadd.f32 %v461_v53, %v460_v50  ;;  %v440_v57 = vsel %vm430_vm4, %v1402_v34, 0.0  ;;  %v457_v58 = vmul.f32 %v1402_v34, %v1402_v34  ;;  %v483_v26 = vld [vmem:[%s1427_s10] sm:$0x3] }
 0x18d   : > { %741 = dma.vmem_to_hbm [thread:$0]  (%p1616_p2), %s1437_s12, 512, %s1443_s3, %s488_s21, %s1117_s13, %s1117_s13, %s1118_s6   ;;  %v465_v59 = vsel %vm430_vm4, %v455_v48, 0.0  ;;  %v442_v62 = vsel %vm430_vm4, %v1396_v18, 0.0  ;;  %v458_v63 = vmul.f32 %v1396_v18, %v1396_v18  ;;  %v467_v0 = vsel %vm430_vm4, %v456_v52, 0.0 }
 0x18e   : > { %v439_v60 = vadd.f32 %v438_v51, %v437_v55  ;;  %v464_v61 = vadd.f32 %v463_v54, %v462_v56  ;;  %v444_v3 = vsel %vm430_vm4, %v1400_v28, 0.0  ;;  %v459_v4 = vmul.f32 %v1400_v28, %v1400_v28  ;;  %s1617_s5 = sld [smem:[#allocation20_spill]]  ;;  %s699_s1 = sshll.u32 %s1096_s22, 7 }
 0x18f   : > { %v469_v5 = vsel %vm430_vm4, %v457_v58, 0.0  ;;  %v471_v8 = vsel %vm430_vm4, %v458_v63, 0.0  ;;  %vm481_vm5 = vcmask 1040384   ;;  %s524_s12 = sshll.u32 %s1427_s10, 4  ;;  %vm485_vm6 = vcmask 517120   ;;  %s1618_s18 = sld [smem:[#allocation25_spill]]  ;;  %s1498_s12 = int_to_ptr.vmem [resolvable:$true] %s524_s12 }
 0x190   : > { %v441_v1 = vadd.f32 %v440_v57, %v439_v60  ;;  %v466_v2 = vadd.f32 %v465_v59, %v464_v61  ;;  %v473_v11 = vsel %vm430_vm4, %v459_v4, 0.0  ;;  %s493_s29 = scalar_lea.sflag [#allocation10], %s271_s4  ;;  %s978_s8 = scalar_lea.vmem %s1498_s12, 128 }
 0x191   : > { %p979_p2 = scmp.ne.s32.totalorder %s1498_s12, %s978_s8  ;;  %s1119_s22 = smov [#allocation9]  }
 0x192   : > { %v443_v6 = vadd.f32 %v442_v62, %v441_v1  ;;  %v468_v7 = vadd.f32 %v467_v0, %v466_v2  ;;  %s982_s28 = sshll.u32 %s1119_s22, 4  ;;  %s983_s28 = int_to_ptr.vmem [resolvable:$false] %s982_s28 }
 0x193   : > { %s984_s30 = scalar_lea.vmem %s983_s28, 256  ;;  %p985_p7 = scmp.lt.s32.totalorder %s1498_s12, %s983_s28 }
 0x194   : > { %v445_v9 = vadd.f32 %v444_v3, %v443_v6  ;;  %v470_v10 = vadd.f32 %v469_v5, %v468_v7  ;;  %p1620_p5 = scmp.ne.s32.totalorder %s1617_s5, 0  ;;  %p986_p12 = scmp.lt.s32.totalorder %s984_s30, %s978_s8 }
 0x195   : > { %s1619_s2 = smov %s1618_s18  ;;  %s1496_s23 = scalar_lea.hbm %s1618_s18, %s699_s1 }
 0x196   : > { %v446_v12 = vrot.slane %v445_v9, 4  ;;  %v472_v13 = vadd.f32 %v471_v8, %v470_v10  ;;  %p980_p3 = pnand %p979_p2, %p1620_p5  ;;  %p987_p1 = por %p986_p12, %p985_p7 }
 0x198   : > { %v447_v14 = vadd.f32 %v446_v12, %v445_v9  ;;  %v474_v15 = vadd.f32 %v473_v11, %v472_v13  ;;  %p981_p8 = pneg %p980_p3 }
 0x19a   : > { %v448_v16 = vrot.slane %v447_v14, 2  ;;  %v475_v17 = vrot.slane %v474_v15, 4  ;;  %p988_p0 = pnand %p987_p1, %p981_p8 }
 0x19c   : > { %v449_v18 = vadd.f32 %v448_v16, %v447_v14  ;;  %v476_v19 = vadd.f32 %v475_v17, %v474_v15 }
 0x19e   : > { %v450_v20 = vrot.slane %v449_v18, 1  ;;  %v477_v21 = vrot.slane %v476_v19, 2 }
 0x1a0   : > { %v478_v22 = vadd.f32 %v477_v21, %v476_v19  ;;  %v451_v23 = vadd.f32 %v450_v20, %v449_v18 }
 0x1a2   : > { %v479_v24 = vrot.slane %v478_v22, 1 }
 0x1a4   : > { %v480_v25 = vadd.f32 %v479_v24, %v478_v22 }
 0x1a6   : > { %v482_v27 = vsel %vm481_vm5, %v451_v23, %v480_v25 }
 0x1a7   : > { %v484_v28 = vadd.f32 %v483_v26, %v482_v27 }
 0x1a9   : > { %486 = vst.msk [vmem:[%s1427_s10] sm:$0x3] %vm485_vm6, %v484_v28 }
 0x1aa   : > { %991 = shalt.err (!%p988_p0)
}
 0x1ab   : > { %s992_s4 = scalar_lea.hbm %s1496_s23, 128  ;;  %s996_s25 = scalar_lea.hbm %s1619_s2, 768 }
 0x1ac   : > { %p993_p10 = scmp.ne.s32.totalorder %s1496_s23, %s992_s4  ;;  %p997_p9 = scmp.lt.u32.totalorder %s1496_s23, %s1619_s2 }
 0x1ad   : > { %p998_p11 = scmp.lt.u32.totalorder %s996_s25, %s992_s4  ;;  %p1000_p2 = scmp.lt.u32.totalorder %s992_s4, %s1496_s23 }
 0x1ae   : > { %p994_p4 = pnand %p993_p10, %p1620_p5 }
 0x1af   : > { %p999_p6 = por %p998_p11, %p997_p9 }
 0x1b0   : > { %p995_p13 = pneg %p994_p4 }
 0x1b1   : > { %p1001_p3 = por %p1000_p2, %p999_p6 }
 0x1b3   : > { %p1002_p8 = pnand %p1001_p3, %p995_p13 }
 0x1b5   : > { %1005 = shalt.err (!%p1002_p8)
}
 0x1b6   : > { %742 = dma.vmem_to_hbm [thread:$0]  (%p1620_p5), %s1498_s12, 128, %s1496_s23, %s493_s29  }
 0x1b7 PF: > { %s1621_s6 = sld [smem:[#allocation18_spill]]  ;;  %s1622_s1 = sld [smem:[#allocation16_spill]] }
 0x1b8   : > { %s1623_s3 = sld [smem:[#allocation19_spill]] }
 0x1bd   : > { %p768_p7 = scmp.ge.s32.totalorder %s1621_s6, 2  ;;  %s536_s21 = sand.u32 1, %s1622_s1  }
 0x1be   : > { %p1624_p12 = scmp.ne.s32.totalorder %s1623_s3, 0  ;;  %s537_s18 = scalar_lea.sflag [#allocation4], %s536_s21 }
 0x1c0   : > { %p757_p1 = pnand %p768_p7, %p1624_p12 }
 0x1c2   : > { %1059 = dma.done.wait (!%p757_p1), %s537_s18, 512  }
 0x1c3   : > { %1061 = vsyncadd (!%p757_p1), %s537_s18, 4294966784  ;;  %s1625_s8 = sld [smem:[#allocation15_spill]]  ;;  %s1626_s22 = sld [smem:[#allocation21_spill]] }
 0x1c9   : > { %s545_s28 = sand.u32 1, %s1625_s8   ;;  %p1627_p0 = scmp.ne.s32.totalorder %s1626_s22, 0 }
 0x1ca   : > { %s546_s5 = scalar_lea.sflag [#allocation10], %s545_s28 }
 0x1cb   : > { %p760_p10 = pnand %p768_p7, %p1627_p0 }
 0x1cd   : > { %1063 = dma.done.wait (!%p760_p10), %s546_s5, 128  }
 0x1ce   : > { %1065 = vsyncadd (!%p760_p10), %s546_s5, 4294967168  ;;  %s25_s25 = sadd.s32 1, %s1621_s6   ;;  %s1628_s12 = smov %s1338_s15 }
 0x1cf   : > { %p22_p5 = scmp.ge.s32.totalorder %s25_s25, 14   ;;  %s1629_s21 = sld [smem:[#allocation17_spill]] }
 0x1d0   : > { %s1630_s15 = smov %s1072_s16  ;;  %s1631_s16 = smov %s1076_s17 }
 0x1d1   : > { %s1632_s17 = smov %s1628_s12  ;;  %s1633_s18 = smov %s1084_s19 }
 0x1d2   : > { %s1634_s19 = smov %s1088_s20  ;;  %s1635_s20 = smov %s1341_s26 }
 0x1d3   : > { %s1636_s22 = smov %s1104_s24  ;;  %s1637_s23 = smov %s1640_s7 }
 0x1d4   : > { %s1638_s24 = smov %s1644_s9  ;;  %24 = sbr.rel (!%p22_p5) target bundleno = 17 (0x11), region = 106 }
 0x1db   :  { %551 = vsyncpa [#allocation3], 1 }
 0x1dc   :  { %553 = vsyncpa [#allocation3 + $0x1], 1 }
 0x1dd   :  { %554 = vsyncpa [#allocation6], 1 }
 0x1de   :  { %555 = vsyncpa [#allocation4], 1 }
 0x1df   :  { %557 = vsyncpa [#allocation4 + $0x1], 1 }
 0x1e0   :  { %558 = vsyncpa [#allocation10], 1 }
 0x1e1   :  { %560 = vsyncpa [#allocation10 + $0x1], 1 }

</bundles_post_ra>
